<compile_context>
chip_gen: v7x
topology: tpu7x:2x2x1
jax: 0.10.0
libtpu: 0.0.40
codegen_flags: <defaults>
</compile_context>

<pallas_src>
import functools

import numpy as np
import jax
import jax.numpy as jnp
from jax.experimental import pallas as pl
from jax.experimental.pallas import tpu as pltpu  # noqa: F401  (kept for TPU ext use)


def _dropout_kernel(x_ref, u_ref, o_ref, *, p: float, scale: float):
    """Elementwise dropout: keep iff u >= p, survivors scaled by 1/(1-p)."""
    keep = u_ref[...] >= np.float32(p)
    o_ref[...] = jnp.where(
        keep, x_ref[...] * np.float32(scale), 0.0
    ).astype(o_ref.dtype)


def prompt_forward(prompt_embeddings: jax.Array,
                   dropout_p: float,
                   rng_key: jax.Array,
                   training: bool = True) -> jax.Array:
    """Pallas equivalent of Prompt.forward()."""
    # Dropout is identity in eval mode / p == 0 -> no kernel launch at all.
    if (not training) or dropout_p == 0.0:
        return prompt_embeddings

    T, D = prompt_embeddings.shape
    n = T * D
    # Present a lane-dense (multiple-of-128 last dim) block when possible so
    # the store is an unmasked full-lane vst.
    if n % 128 == 0:
        kshape = (n // 128, 128)
    else:
        kshape = (T, D)
    x = prompt_embeddings.reshape(kshape)

    # Uniform[0,1) draws generated with jax.random in the wrapper — portable
    # across real TPU and interpret mode (no TPU-only PRNG primitives).
    u = jax.random.uniform(rng_key, kshape, dtype=jnp.float32)

    scale = 1.0 / (1.0 - dropout_p)
    kernel = functools.partial(
        _dropout_kernel, p=float(dropout_p), scale=float(scale))

    out = pl.pallas_call(
        kernel,
        out_shape=jax.ShapeDtypeStruct(kshape, prompt_embeddings.dtype),
        in_specs=[
            pl.BlockSpec(kshape, lambda: (0, 0)),  # embeddings
            pl.BlockSpec(kshape, lambda: (0, 0)),  # uniform draws
        ],
        out_specs=pl.BlockSpec(kshape, lambda: (0, 0)),
    )(x, u)
    return out.reshape(T, D)


if __name__ == "__main__":
    # Small shapes consistent with the module: num_token=8, node_fea_size=32.
    num_token = 8
    node_fea_size = 32
    dropout_p = 0.1
    val = 0.001

    key = jax.random.PRNGKey(0)
    pkey, dkey = jax.random.split(key)

    # nn.init.uniform_(-val, val) on a zeros Parameter -> uniform(-val, val).
    prompt_embeddings = jax.random.uniform(
        pkey, (num_token, node_fea_size), dtype=jnp.float32,
        minval=-val, maxval=val)

    out = prompt_forward(prompt_embeddings, dropout_p, dkey, training=True)
    out = jax.block_until_ready(out)

    # Sanity: every element is either 0 (dropped) or x / (1 - p) (kept).
    scaled = prompt_embeddings / (1.0 - dropout_p)
    ok = jnp.all(jnp.logical_or(out == 0.0, jnp.abs(out - scaled) < 1e-6))
    assert bool(ok), "dropout output mismatch"

    # Eval-mode (identity) path — no kernel launch, returns the array as-is.
    out_eval = prompt_forward(prompt_embeddings, dropout_p, dkey, training=False)
    out_eval = jax.block_until_ready(out_eval)
    assert bool(jnp.all(out_eval == prompt_embeddings)), "identity path mismatch"

    print("KERNEL_OK")
</pallas_src>

<mosaic_0001>
module attributes {stable_mosaic.version = 11 : i64} {
  func.func @_dropout_kernel(%arg0: memref<2x128xf32, #tpu.memory_space<vmem>>, %arg1: memref<2x128xf32, #tpu.memory_space<vmem>>, %arg2: memref<2x128xf32, #tpu.memory_space<vmem>>) attributes {dimension_semantics = [], scalar_prefetch = 0 : i64, scratch_operands = 0 : i64, tpu.core_type = #tpu.core_type<tc>} {
    %c0 = arith.constant 0 : index
    %c0_0 = arith.constant 0 : index
    %0 = vector.load %arg1[%c0, %c0_0] : memref<2x128xf32, #tpu.memory_space<vmem>>, vector<2x128xf32>
    %cst = arith.constant 1.000000e-01 : f32
    %1 = vector.broadcast %cst : f32 to vector<2x128xf32>
    %2 = arith.cmpf oge, %0, %1 : vector<2x128xf32>
    %c0_1 = arith.constant 0 : index
    %c0_2 = arith.constant 0 : index
    %3 = vector.load %arg0[%c0_1, %c0_2] : memref<2x128xf32, #tpu.memory_space<vmem>>, vector<2x128xf32>
    %cst_3 = arith.constant 1.11111116 : f32
    %4 = vector.broadcast %cst_3 : f32 to vector<2x128xf32>
    %5 = arith.mulf %3, %4 : vector<2x128xf32>
    %cst_4 = arith.constant 0.000000e+00 : f32
    %6 = vector.broadcast %cst_4 : f32 to vector<2x128xf32>
    %7 = arith.select %2, %5, %6 : vector<2x128xi1>, vector<2x128xf32>
    %c0_5 = arith.constant 0 : index
    %c0_6 = arith.constant 0 : index
    %8 = vector.load %arg2[%c0_5, %c0_6] : memref<2x128xf32, #tpu.memory_space<vmem>>, vector<2x128xf32>
    tpu.vector_store %arg2[%c0_5, %c0_6], %7 {strides = array<i32>} : memref<2x128xf32, #tpu.memory_space<vmem>>, vector<2x128xf32>,
    return
  }
}

</mosaic_0001>

<bundles_post_ra>
// kernel: tpu_custom_call.1
= control target key start
LH: loop header
LB: loop body
LE: loop exit
PB: predicated region body
PF: predicated region fallthrough
CT: control target
= control target key end

     0   :  { %7 = vsyncpa [#allocation3], 0  ;;  %s139_s0 = inlined_call_operand.hbm [shape: f32[2,128], index: 0, kind: input, shape index: {}]   ;;  %s140_s1 = inlined_call_operand.vmem [shape: f32[2,128], index: 1, kind: input, shape index: {}]   ;;  %s141_s2 = inlined_call_operand.hbm [shape: f32[2,128], index: 2, kind: output, shape index: {}]  }
   0x1   :  { %8 = vsyncpa [#allocation4], 0  ;;  %s95_s9 = smov [#allocation2]   ;;  %s47_s13 = scalar_lea.hbm %s139_s0, 32 }
   0x2   :  { %s15_s10 = sshll.u32 %s95_s9, 4  ;;  %p48_p0 = scmp.ne.s32.totalorder %s139_s0, %s47_s13  ;;  %s16_s10 = int_to_ptr.vmem [resolvable:$true] %s15_s10 }
   0x3   :  { %p51_p1 = scmp.lt.u32.totalorder %s47_s13, %s139_s0 }
   0x5   :  { %p53_p2 = pnand %p51_p1, %p48_p0 }
   0x7   :  { %56 = shalt.err (!%p53_p2)
}
   0x8   :  { %s57_s18 = scalar_lea.vmem %s16_s10, 32  ;;  %p62_p4 = scmp.lt.s32.totalorder %s16_s10, %s16_s10 }
   0x9   :  { %p58_p3 = scmp.ne.s32.totalorder %s16_s10, %s57_s18  ;;  %p63_p5 = scmp.lt.s32.totalorder %s57_s18, %s57_s18 }
   0xb   :  { %p64_p6 = por %p63_p5, %p62_p4 }
   0xd   :  { %p65_p7 = pnand %p64_p6, %p58_p3 }
   0xf   :  { %68 = shalt.err (!%p65_p7)
}
  0x10   :  { %18 = dma.hbm_to_vmem [thread:$0]  %s139_s0, 32, %s16_s10, [#allocation3]  }
  0x11   :  { %91 = dma.done.wait [#allocation3], 32  }
  0x12   :  { %92 = vsyncadd [#allocation3], 4294967264  ;;  %s96_s21 = smov [#allocation5]   ;;  %v24_v0 = vld [vmem:[%s140_s1] sm:$0x3] }
  0x13   :  { %s36_s22 = sshll.u32 %s96_s21, 4  ;;  %v26_v1 = vld [vmem:[#allocation2] sm:$0x3]  ;;  %vm25_vm0 = vcmp.ge.f32.partialorder %v24_v0, 0.1  ;;  %s37_s22 = int_to_ptr.vmem [resolvable:$true] %s36_s22 }
  0x14   :  { %v27_v2 = vmul.f32 1.1111112, %v26_v1  ;;  %s69_s25 = scalar_lea.vmem %s37_s22, 32  ;;  %p74_p9 = scmp.lt.s32.totalorder %s37_s22, %s37_s22 }
  0x15   :  { %p70_p8 = scmp.ne.s32.totalorder %s37_s22, %s69_s25  ;;  %p75_p10 = scmp.lt.s32.totalorder %s69_s25, %s69_s25 }
  0x16   :  { %v28_v3 = vsel %vm25_vm0, %v27_v2, 0.0 }
  0x17   :  { %29 = vst [vmem:[#allocation5] sm:$0x3] %v28_v3  ;;  %p76_p11 = por %p75_p10, %p74_p9 }
  0x19   :  { %p77_p12 = pnand %p76_p11, %p70_p8 }
  0x1b   :  { %80 = shalt.err (!%p77_p12)
}
  0x1c   :  { %s81_s27 = scalar_lea.hbm %s141_s2, 32 }
  0x1d   :  { %p82_p13 = scmp.ne.s32.totalorder %s141_s2, %s81_s27  ;;  %p85_p0 = scmp.lt.u32.totalorder %s81_s27, %s141_s2 }
  0x1f   :  { %p87_p1 = pnand %p85_p0, %p82_p13 }
  0x21   :  { %90 = shalt.err (!%p87_p1)
}
  0x22   :  { %39 = dma.vmem_to_hbm [thread:$0]  %s37_s22, 32, %s141_s2, [#allocation4]  }
  0x23   :  { %93 = dma.done.wait [#allocation4], 32  }
  0x24   :  { %94 = vsyncadd [#allocation4], 4294967264 }
  0x25   :  { %43 = vsyncpa [#allocation3], 1 }
  0x26   :  { %44 = vsyncpa [#allocation4], 1 }

</bundles_post_ra>
